<compile_context>
chip_gen: v6e
topology: v6e:2x2x1
jax: 0.10.0
libtpu: 0.0.40
codegen_flags: <defaults>
</compile_context>

<pallas_src>
import numpy as np
import jax
import jax.numpy as jnp
from jax.experimental import pallas as pl
from jax.experimental.pallas import tpu as pltpu

BLOCK_B = 16      # images per grid step (batched into the matmul M dimension)
HS_A = 28         # per-image row-slab height, stage A (28x28 ... 24x24)
HS_B = 12         # per-image row-slab height, stage B (12x12 ... 8x8)
LANE = 128

# Does pltpu.roll follow jnp.roll semantics?  Probed once on device so the
# kernel is correct under either rotation-direction convention.
_ROLL_JNP = None


def _probe_roll_semantics():
    global _ROLL_JNP
    if _ROLL_JNP is not None:
        return _ROLL_JNP

    def k(x_ref, o_ref):
        o_ref[...] = pltpu.roll(x_ref[...], 1, 0)

    x = jnp.arange(8, dtype=jnp.float32)[:, None] * jnp.ones((1, LANE), jnp.float32)
    y = pl.pallas_call(k, out_shape=jax.ShapeDtypeStruct((8, LANE), jnp.float32))(x)
    _ROLL_JNP = bool(float(y[1, 0]) == 0.0)     # jnp.roll: y[1] == x[0]
    return _ROLL_JNP


# ----------------------------------------------------------------------------
# The single fused kernel (BLOCK_B images per grid step)
# ----------------------------------------------------------------------------
def _net_kernel(x_ref,
                w1, b1, w2, b2, w3, b3,
                se, so, dm,
                wa1, ba1, w4, b4, w5, b5, wa2, ba2,
                w6, b6, w7, b7,
                hsum, wh, bh, ma, mb,
                o_ref):
    f32, bf16 = jnp.float32, jnp.bfloat16
    roll_jnp = True if _ROLL_JNP is None else _ROLL_JNP

    def shift_up(v, k):
        # out[r] = v[(r + k) % nrows]   (k may be negative); XLU sublane roll.
        n = v.shape[0]
        s = (-k) % n if roll_jnp else k % n
        return v if s == 0 else pltpu.roll(v, s, 0)

    def conv3x3(x, w_ref, b_ref, mask, pad):
        # x: (R, Lin) f32.  w_ref: (3*Lin, Lout) bf16 banded matrix (kw and
        # horizontal padding absorbed; the 3 vertical taps are K-stacked).
        parts = [shift_up(x, ki - pad).astype(bf16) for ki in range(3)]
        xc = jnp.concatenate(parts, axis=1)                 # 128-aligned pieces
        y = jnp.dot(xc, w_ref[...], preferred_element_type=f32) + b_ref[...]
        y = jnp.maximum(y, 0.0)
        return y if mask is None else y * mask

    def conv1x1(x, w_ref, b_ref, mask):
        y = jnp.dot(x.astype(bf16), w_ref[...],
                    preferred_element_type=f32) + b_ref[...]
        y = jnp.maximum(y, 0.0)
        return y if mask is None else y * mask

    x = x_ref[...]                                      # (B*28, 128) f32
    a = conv3x3(x, w1, b1, None, 0)                     # 26x26x8   -> 256 lanes
    a = conv3x3(a, w2, b2, ma[...], 0)                  # 24x24x12  -> 384
    a = conv3x3(a, w3, b3, None, 1)                     # 24x24x16  -> 384
    # --- MaxPool2d(2,2): column pairs via selection matmuls + max, row pairs
    #     via an XLU roll + max, then a block-diagonal row-decimation matmul.
    ab = a.astype(bf16)
    cm = jnp.maximum(jnp.dot(ab, se[...], preferred_element_type=f32),
                     jnp.dot(ab, so[...], preferred_element_type=f32))
    rm = jnp.maximum(cm, shift_up(cm, 1))
    a = jnp.dot(dm[...], rm.astype(bf16), preferred_element_type=f32)  # (B*12,256)
    a = conv1x1(a, wa1, ba1, None)                      # 12x12x8   -> 128
    a = conv3x3(a, w4, b4, None, 0)                     # 10x10x16  -> 256
    a = conv3x3(a, w5, b5, None, 0)                     #  8x8x32   -> 256
    a = conv1x1(a, wa2, ba2, mb[...])                   #  8x8x10   -> 128
    a = conv3x3(a, w6, b6, mb[...], 1)                  #  8x8x16   -> 128
    a = conv3x3(a, w7, b7, None, 1)                     #  8x8x20   -> 256
    # --- head: AvgPool2d(5) row-sum (left matmul) + folded conv8 + log_softmax
    rs = jnp.dot(hsum[...], a.astype(bf16), preferred_element_type=f32)  # (B,256)
    logits = jnp.dot(rs.astype(bf16), wh[...],
                     preferred_element_type=f32) + bh[...]               # (B,128)
    zmax = jnp.max(logits, axis=-1, keepdims=True)
    z = logits - zmax
    lse = jnp.log(jnp.sum(jnp.exp(z), axis=-1, keepdims=True))
    o_ref[...] = (z - lse).astype(o_ref.dtype)


# ----------------------------------------------------------------------------
# pallas_call wrapper
# ----------------------------------------------------------------------------
def _const_spec(a):
    nd = a.ndim
    return pl.BlockSpec(a.shape, lambda n, _nd=nd: (0,) * _nd)


def forward(x_nchw, ops, *, block_b=BLOCK_B):
    N, C, H, W = x_nchw.shape
    assert (C, H, W) == (1, 28, 28), "architecture implies 1x28x28 inputs"
    npad = -(-N // block_b) * block_b
    x = jnp.transpose(x_nchw, (0, 2, 3, 1)).reshape(N, H, W * C)
    x = jnp.pad(x, ((0, npad - N), (0, 0), (0, LANE - W * C)))
    x = x.reshape(npad * H, LANE)

    in_specs = [pl.BlockSpec((block_b * H, LANE), lambda n: (n, 0))]
    in_specs += [_const_spec(a) for a in ops]
    out = pl.pallas_call(
        _net_kernel,
        out_shape=jax.ShapeDtypeStruct((npad, LANE), jnp.float32),
        grid=(npad // block_b,),
        in_specs=in_specs,
        out_specs=pl.BlockSpec((block_b, LANE), lambda n: (n, 0)),
        compiler_params=pltpu.CompilerParams(
            dimension_semantics=("parallel",),
            vmem_limit_bytes=32 * 1024 * 1024),
    )(x, *ops)
    return out[:N, :10]


# ----------------------------------------------------------------------------
# Host-side weight transformations (done once at init)
# ----------------------------------------------------------------------------
def _rup(n, m=LANE):
    return -(-n // m) * m


def _conv3_mat(w, w_in, pad):
    # w: (3,3,cin,cout) -> (3*Lin_pad, Lout_pad) K-stacked banded matrix.
    kh, kw, cin, cout = w.shape
    w_out = w_in - kw + 1 + 2 * pad
    lin, lout = _rup(w_in * cin), _rup(w_out * cout)
    m = np.zeros((kh, lin, lout), np.float32)
    for ki in range(kh):
        for kj in range(kw):
            for wo in range(w_out):
                wi = wo + kj - pad
                if 0 <= wi < w_in:
                    m[ki, wi * cin:(wi + 1) * cin,
                          wo * cout:(wo + 1) * cout] = w[ki, kj]
    return m.reshape(kh * lin, lout)


def _conv1_mat(w, w_sz):
    cin, cout = w.shape
    m = np.zeros((_rup(w_sz * cin), _rup(w_sz * cout)), np.float32)
    for p in range(w_sz):
        m[p * cin:(p + 1) * cin, p * cout:(p + 1) * cout] = w
    return m


def _bias_row(b, w_out):
    cout = b.shape[0]
    r = np.zeros((1, _rup(w_out * cout)), np.float32)
    r[0, :w_out * cout] = np.tile(np.asarray(b, np.float32), w_out)
    return r


def _pool_col_mats(w_in, c):
    wo = w_in // 2
    lin, lout = _rup(w_in * c), _rup(wo * c)
    se = np.zeros((lin, lout), np.float32)
    so = np.zeros((lin, lout), np.float32)
    eye = np.eye(c, dtype=np.float32)
    for j in range(wo):
        se[(2 * j) * c:(2 * j + 1) * c, j * c:(j + 1) * c] = eye
        so[(2 * j + 1) * c:(2 * j + 2) * c, j * c:(j + 1) * c] = eye
    return se, so


def _pool_row_mat(bsz, hs_in, hs_out, h_out):
    d = np.zeros((bsz * hs_out, bsz * hs_in), np.float32)
    for b in range(bsz):
        for j in range(h_out):
            d[b * hs_out + j, b * hs_in + 2 * j] = 1.0
    return d


def _head_sum_mat(bsz, hs, rows):
    m = np.zeros((bsz, bsz * hs), np.float32)
    for b in range(bsz):
        m[b, b * hs:b * hs + rows] = 1.0
    return m


def _head_mat(w8, w_in, pool):
    # AvgPool2d(pool) column selection + 1x1 conv8 folded; output padded to 128.
    cin, cout = w8.shape
    m = np.zeros((_rup(w_in * cin), LANE), np.float32)
    blk = np.asarray(w8, np.float32) / float(pool * pool)
    for wc in range(pool):
        m[wc * cin:(wc + 1) * cin, :cout] = blk
    return m


def _head_bias(b8):
    r = np.full((1, LANE), -1e9, np.float32)   # pad logits -> exp underflows to 0
    r[0, :b8.shape[0]] = b8
    return r


def _row_mask(bsz, slab, hv):
    m = np.zeros((bsz * slab, 1), np.float32)
    for b in range(bsz):
        m[b * slab:b * slab + hv, 0] = 1.0
    return m


def build_ops(raw, block_b=BLOCK_B):
    _probe_roll_semantics()
    BF, F = jnp.bfloat16, jnp.float32

    def c3(name, w_in, pad):
        w, b = raw[name]
        w_out = w_in - 3 + 1 + 2 * pad
        return (jnp.asarray(_conv3_mat(w, w_in, pad), BF),
                jnp.asarray(_bias_row(b, w_out), F))

    def c1(name, w_sz):
        w, b = raw[name]
        return (jnp.asarray(_conv1_mat(w[0, 0], w_sz), BF),
                jnp.asarray(_bias_row(b, w_sz), F))

    w1, b1 = c3("conv1", 28, 0)
    w2, b2 = c3("conv2", 26, 0)
    w3, b3 = c3("conv3", 24, 1)
    se, so = (jnp.asarray(a, BF) for a in _pool_col_mats(24, 16))
    dm = jnp.asarray(_pool_row_mat(block_b, HS_A, HS_B, 12), BF)
    wa1, ba1 = c1("ant1", 12)
    w4, b4 = c3("conv4", 12, 0)
    w5, b5 = c3("conv5", 10, 0)
    wa2, ba2 = c1("ant2", 8)
    w6, b6 = c3("conv6", 8, 1)
    w7, b7 = c3("conv7", 8, 1)
    hsum = jnp.asarray(_head_sum_mat(block_b, HS_B, 5), BF)
    w8, b8 = raw["conv8"]
    wh = jnp.asarray(_head_mat(w8[0, 0], 8, 5), BF)
    bh = jnp.asarray(_head_bias(np.asarray(b8, np.float32)), F)
    ma = jnp.asarray(_row_mask(block_b, HS_A, 24), F)    # zero slack rows (stage A)
    mb = jnp.asarray(_row_mask(block_b, HS_B, 8), F)     # zero slack rows (stage B)
    return (w1, b1, w2, b2, w3, b3, se, so, dm,
            wa1, ba1, w4, b4, w5, b5, wa2, ba2,
            w6, b6, w7, b7, hsum, wh, bh, ma, mb)


# ----------------------------------------------------------------------------
# Deterministic init (PyTorch-default-like uniform(-1/sqrt(fan_in)))
# ----------------------------------------------------------------------------
def init_conv(key, cin, cout, k):
    fan_in = cin * k * k
    bound = 1.0 / (fan_in ** 0.5)
    kw_, kb_ = jax.random.split(key)
    w = jax.random.uniform(kw_, (k, k, cin, cout), jnp.float32, -bound, bound)
    b = jax.random.uniform(kb_, (cout,), jnp.float32, -bound, bound)
    return np.asarray(w), np.asarray(b)


# ----------------------------------------------------------------------------
# Pure-JAX reference (NHWC im2col convs; bf16 matmul operands to match the
# kernel precision) — validates the banded/roll/pool transformations.
# ----------------------------------------------------------------------------
def _ref_forward(x_nchw, raw):
    bf16, f32 = jnp.bfloat16, jnp.float32

    def conv(x, w, b, pad=0):
        if pad:
            x = jnp.pad(x, ((0, 0), (pad, pad), (pad, pad), (0, 0)))
        n, h, wd, c = x.shape
        kh, kw, cin, cout = w.shape
        ho, wo = h - kh + 1, wd - kw + 1
        cols = [x[:, i:i + ho, j:j + wo, :] for i in range(kh) for j in range(kw)]
        p = jnp.stack(cols, axis=3).reshape(n * ho * wo, kh * kw * cin)
        wm = jnp.asarray(w, f32).reshape(kh * kw * cin, cout)
        out = jnp.dot(p.astype(bf16), wm.astype(bf16),
                      preferred_element_type=f32).reshape(n, ho, wo, cout)
        return jnp.maximum(out + jnp.asarray(b, f32), 0.0)

    x = jnp.transpose(x_nchw, (0, 2, 3, 1))
    n = x.shape[0]
    x = conv(x, *raw["conv1"])
    x = conv(x, *raw["conv2"])
    x = conv(x, *raw["conv3"], pad=1)
    x = x.astype(bf16).astype(f32)                        # kernel pools bf16 values
    x = x.reshape(n, 12, 2, 12, 2, 16).max(axis=(2, 4))   # MaxPool2d(2,2)
    x = conv(x, *raw["ant1"])
    x = conv(x, *raw["conv4"])
    x = conv(x, *raw["conv5"])
    x = conv(x, *raw["ant2"])
    x = conv(x, *raw["conv6"], pad=1)
    x = conv(x, *raw["conv7"], pad=1)
    # AvgPool2d(5) + conv8 + log_softmax (same folding / precision as the kernel)
    xb = x.astype(bf16).astype(f32)
    rs = jnp.sum(xb[:, :5, :5, :], axis=1).reshape(n, 100)
    w8, b8 = raw["conv8"]
    hw = np.tile(np.asarray(w8[0, 0], np.float32), (5, 1)) / 25.0
    logits = jnp.dot(rs.astype(bf16), jnp.asarray(hw).astype(bf16),
                     preferred_element_type=f32) + jnp.asarray(b8, f32)
    return jax.nn.log_softmax(logits, axis=-1)


if __name__ == "__main__":
    key = jax.random.PRNGKey(0)
    keys = jax.random.split(key, 11)
    raw = {
        "conv1": init_conv(keys[0], 1, 8, 3),
        "conv2": init_conv(keys[1], 8, 12, 3),
        "conv3": init_conv(keys[2], 12, 16, 3),
        "ant1":  init_conv(keys[3], 16, 8, 1),
        "conv4": init_conv(keys[4], 8, 16, 3),
        "conv5": init_conv(keys[5], 16, 32, 3),
        "ant2":  init_conv(keys[6], 32, 10, 1),
        "conv6": init_conv(keys[7], 10, 16, 3),
        "conv7": init_conv(keys[8], 16, 20, 3),
        "conv8": init_conv(keys[9], 20, 10, 1),
    }
    ops = build_ops(raw)

    # 1x28x28 input implied by the layer arithmetic; 32 images -> grid of 2
    # batched steps of 16 images (even grid so both v7x TensorCores get work).
    x = jax.random.normal(keys[10], (32, 1, 28, 28), jnp.float32)

    out = jax.jit(forward)(x, ops)
    out = jax.block_until_ready(out)

    assert out.shape == (32, 10), out.shape
    assert bool(jnp.all(jnp.isfinite(out)))
    row_sums = jnp.exp(out).sum(axis=-1)
    assert bool(jnp.all(jnp.abs(row_sums - 1.0) < 1e-3)), row_sums

    ref = _ref_forward(x, raw)
    err = float(jnp.max(jnp.abs(out - ref)))
    assert err < 1e-2, err

    print("KERNEL_OK")
</pallas_src>

<mosaic_0001>
module attributes {stable_mosaic.version = 11 : i64} {
  func.func @k(%arg0: memref<8x128xf32, #tpu.memory_space<vmem>>, %arg1: memref<8x128xf32, #tpu.memory_space<vmem>>) attributes {dimension_semantics = [], scalar_prefetch = 0 : i64, scratch_operands = 0 : i64, tpu.core_type = #tpu.core_type<tc>} {
    %c0 = arith.constant 0 : index
    %c0_0 = arith.constant 0 : index
    %0 = vector.load %arg0[%c0, %c0_0] : memref<8x128xf32, #tpu.memory_space<vmem>>, vector<8x128xf32>
    %c1_i32 = arith.constant 1 : i32
    %1 = tpu.dynamic_rotate %0 by %c1_i32 dim 0 : vector<8x128xf32>, i32 -> vector<8x128xf32>
    %c0_1 = arith.constant 0 : index
    %c0_2 = arith.constant 0 : index
    %2 = vector.load %arg1[%c0_1, %c0_2] : memref<8x128xf32, #tpu.memory_space<vmem>>, vector<8x128xf32>
    tpu.vector_store %arg1[%c0_1, %c0_2], %1 {strides = array<i32>} : memref<8x128xf32, #tpu.memory_space<vmem>>, vector<8x128xf32>,
    return
  }
}

</mosaic_0001>

<bundles_post_ra>
// kernel: tpu_custom_call.1
= control target key start
LH: loop header
LB: loop body
LE: loop exit
PB: predicated region body
PF: predicated region fallthrough
CT: control target
= control target key end

     0   :  { %6 = vsyncpa [#allocation3], 0  ;;  %s103_s0 = inlined_call_operand.hbm [shape: f32[8,128], index: 0, kind: input, shape index: {}]   ;;  %s104_s1 = inlined_call_operand.hbm [shape: f32[8,128], index: 1, kind: output, shape index: {}]  }
   0x1   :  { %7 = vsyncpa [#allocation4], 0  ;;  %s85_s6 = smov [#allocation2]  }
   0x2   :  { %s14_s7 = sshll.u32 %s85_s6, 4  ;;  %s15_s7 = int_to_ptr.vmem [resolvable:$true] %s14_s7 }
   0x3   :  { %s49_s8 = scalar_lea.vmem %s15_s7, 128  ;;  %p54_p1 = scmp.lt.s32.totalorder %s15_s7, %s15_s7 }
   0x4   :  { %p50_p0 = scmp.ne.s32.totalorder %s15_s7, %s49_s8  ;;  %p55_p2 = scmp.lt.s32.totalorder %s49_s8, %s49_s8 }
   0x6   :  { %p56_p3 = por %p55_p2, %p54_p1 }
   0x8   :  { %p57_p4 = pnand %p56_p3, %p50_p0 }
   0xa   :  { %60 = shalt.err (!%p57_p4)
}
   0xb   :  { %17 = dma.hbm_to_vmem [thread:$0]  %s103_s0, 128, %s15_s7, [#allocation3]  }
   0xc   :  { %81 = dma.done.wait [#allocation3], 128  }
   0xd   :  { %82 = vsyncadd [#allocation3], 4294967168  ;;  %s86_s11 = smov [#allocation5]   ;;  %v21_v0 = vld [vmem:[#allocation2] sm:$0xff] }
   0xe   :  { %s30_s12 = sshll.u32 %s86_s11, 4  ;;  %v22_v1 = vrot.slane %v21_v0, 7  ;;  %s31_s12 = int_to_ptr.vmem [resolvable:$true] %s30_s12 }
   0xf   :  { %s61_s13 = scalar_lea.vmem %s31_s12, 128  ;;  %p66_p6 = scmp.lt.s32.totalorder %s31_s12, %s31_s12 }
  0x10   :  { %23 = vst [vmem:[#allocation5] sm:$0xff] %v22_v1  ;;  %p62_p5 = scmp.ne.s32.totalorder %s31_s12, %s61_s13  ;;  %p67_p7 = scmp.lt.s32.totalorder %s61_s13, %s61_s13 }
  0x12   :  { %p68_p8 = por %p67_p7, %p66_p6 }
  0x14   :  { %p69_p9 = pnand %p68_p8, %p62_p5 }
  0x16   :  { %72 = shalt.err (!%p69_p9)
}
  0x17   :  { %33 = dma.vmem_to_hbm [thread:$0]  %s31_s12, 128, %s104_s1, [#allocation4]  }
  0x18   :  { %83 = dma.done.wait [#allocation4], 128  }
  0x19   :  { %84 = vsyncadd [#allocation4], 4294967168 }
  0x1a   :  { %37 = vsyncpa [#allocation3], 1 }
  0x1b   :  { %38 = vsyncpa [#allocation4], 1 }

</bundles_post_ra>
